<compile_context>
chip_gen: v7x
topology: tpu7x:2x2x1
jax: 0.10.0
libtpu: 0.0.40
codegen_flags: <defaults>
</compile_context>

<pallas_src>
import numpy as np

import jax
import jax.numpy as jnp
from jax.experimental import pallas as pl
from jax.experimental.pallas import tpu as pltpu


FOLD = 8                  # original batch rows folded per lane-dense super-row
TBF_MAX = 1024            # folded rows per grid step (=> 8192 original rows / step)
VOCABS = (4, 3, 3, 2)     # Selection, ExplorationConst, Playout, ScoreBounds
NFEAT = len(VOCABS)       # 4 categorical features
NVOCAB = sum(VOCABS)      # 12 total vocab slots


# ----------------------------------------------------------------------------
# Kernel
# ----------------------------------------------------------------------------
def _agent_encoder_kernel(idxf_ref,   # [TBf, 32]       int32 (8 rows x 4 idx cols)
                          sel_ref,    # [32, 96]        f32   static lane-routing matrix
                          vpat_ref,   # [1, 96]         f32   local-vocab compare pattern
                          w1b_ref,    # [96, 8*H1]      bf16  blockdiag(tables@W1 + b1/4)
                          w2b_ref,    # [8*H1, 8*H2]    bf16  blockdiag(W2)
                          b2_ref,     # [1, 8*H2]       f32
                          out_ref):   # [TBf, 8*H2]     f32
    # Route each of the 96 (8 rows x 12 vocab slots) lanes to the index column
    # that owns it -- a static permutation expressed as a tiny MXU matmul.
    # Kept in f32 so the equality compare below is exact on small integers.
    idxf = idxf_ref[...].astype(jnp.float32)                         # [TBf, 32]
    idx_sel = jnp.dot(idxf, sel_ref[...],
                      preferred_element_type=jnp.float32)            # [TBf, 96]
    # Combined one-hot over all 4 categorical features for 8 rows at once.
    onehot = (idx_sel == vpat_ref[...]).astype(jnp.bfloat16)         # [TBf, 96]

    # Layer 1: embedding tables AND bias already folded into the weights.
    # (Dropout == identity at eval.)  bf16 MXU operands, f32 accumulate.
    h = jnp.dot(onehot, w1b_ref[...], preferred_element_type=jnp.float32)
    h = jnp.maximum(h, 0.0).astype(jnp.bfloat16)

    # Layer 2.
    h = jnp.dot(h, w2b_ref[...], preferred_element_type=jnp.float32) + b2_ref[...]
    out_ref[...] = jnp.maximum(h, 0.0).astype(out_ref.dtype)


# ----------------------------------------------------------------------------
# One-time parameter folding (keep OUT of the per-call jit path)
# ----------------------------------------------------------------------------
def prepare_params(params):
    """Fold embedding tables + bias1 into layer-1 weights, 8-row block-diag
    everything, and build the static routing matrices.  Run once, cache."""
    tables = (params["sel_tab"], params["exp_tab"], params["play_tab"], params["sb_tab"])
    w1, b1 = params["w1"], params["b1"]
    w2, b2 = params["w2"], params["b2"]
    H1, H2 = w1.shape[1], w2.shape[1]

    # concat(gather(tables, x)) @ W1  ==  onehot12(x) @ (blockstack(tables) @ W1)
    off, pieces = 0, []
    for tab in tables:
        e = tab.shape[1]
        pieces.append(jnp.dot(tab, w1[off:off + e]))
        off += e
    w1p = jnp.concatenate(pieces, axis=0)                         # [12, H1]
    # Bias-1 fold: each folded one-hot row has exactly NFEAT ones, so adding
    # b1/NFEAT to every vocab row reproduces "+ b1" exactly.
    w1p = w1p + b1.reshape(1, H1) / float(NFEAT)

    eye = jnp.eye(FOLD, dtype=jnp.float32)
    w1b = jnp.kron(eye, w1p).astype(jnp.bfloat16)                 # [96, 8*H1]
    w2b = jnp.kron(eye, w2).astype(jnp.bfloat16)                  # [8*H1, 8*H2]
    b2t = jnp.tile(b2.reshape(1, H2), (1, FOLD)).astype(jnp.float32)  # [1, 8*H2]

    # Static lane-routing matrix + local-vocab comparison pattern (numpy, free).
    col_of = np.repeat(np.arange(NFEAT), VOCABS)                           # [12]
    loc_of = np.concatenate([np.arange(v) for v in VOCABS]).astype(np.float32)
    s_small = (col_of[None, :] == np.arange(NFEAT)[:, None]).astype(np.float32)  # [4,12]
    sel_mat = np.kron(np.eye(FOLD, dtype=np.float32), s_small)             # [32, 96]
    vpat = np.tile(loc_of, FOLD)[None, :]                                  # [1, 96]

    return {
        "sel_mat": jnp.asarray(sel_mat),
        "vpat": jnp.asarray(vpat),
        "w1b": w1b,
        "w2b": w2b,
        "b2t": b2t,
    }


# ----------------------------------------------------------------------------
# Wrapper
# ----------------------------------------------------------------------------
def _const_spec(arr):
    # Constant-index_map operands; total footprint < 200 KiB so the default
    # double buffering is fine (single-buffering is a hygiene-only win here).
    return pl.BlockSpec(arr.shape, lambda i: (0, 0))


def _choose_tile(bf):
    if bf <= TBF_MAX:
        return bf                              # single grid step for small batches
    # Large batches: >= 4 grid steps (2 per TensorCore on v7x) so each core
    # still overlaps idx prefetch / out writeback with compute.
    tbf = min(TBF_MAX, pl.cdiv(bf, 4))
    return max(8, (tbf // 8) * 8)              # keep sublane (8) alignment


@jax.jit
def agent_encoder(x, prepared):
    sel_mat, vpat = prepared["sel_mat"], prepared["vpat"]
    w1b, w2b, b2t = prepared["w1b"], prepared["w2b"], prepared["b2t"]
    H2 = w2b.shape[1] // FOLD
    B = x.shape[0]

    # -- Fold the batch: [B,4] -> [bf, 32] (row-major reinterpretation). ------
    pad = (-B) % FOLD
    xp = jnp.pad(x, ((0, pad), (0, 0))) if pad else x
    bf = (B + pad) // FOLD
    idxf = xp.reshape(bf, FOLD * NFEAT).astype(jnp.int32)

    # -- Tile choice + pad to whole tiles (no ragged edge blocks). -------------
    tbf = _choose_tile(bf)
    pad_bf = (-bf) % tbf
    if pad_bf:
        idxf = jnp.pad(idxf, ((0, pad_bf), (0, 0)))
    bft = bf + pad_bf
    grid = (bft // tbf,)

    out_f = pl.pallas_call(
        _agent_encoder_kernel,
        out_shape=jax.ShapeDtypeStruct((bft, FOLD * H2), jnp.float32),
        grid=grid,
        in_specs=[
            pl.BlockSpec((tbf, FOLD * NFEAT), lambda i: (i, 0)),   # idx tile
            _const_spec(sel_mat), _const_spec(vpat),
            _const_spec(w1b), _const_spec(w2b), _const_spec(b2t),
        ],
        out_specs=pl.BlockSpec((tbf, FOLD * H2), lambda i: (i, 0)),
        compiler_params=pltpu.CompilerParams(
            dimension_semantics=("parallel",)),
    )(idxf, sel_mat, vpat, w1b, w2b, b2t)

    out = out_f.reshape(bft * FOLD, H2)
    return out[:B]


# ----------------------------------------------------------------------------
# Pure-JAX reference (mirrors the PyTorch forward, eval mode)
# ----------------------------------------------------------------------------
def agent_encoder_ref(x, params):
    e = jnp.concatenate(
        [
            params["sel_tab"][x[:, 0]],
            params["exp_tab"][x[:, 1]],
            params["play_tab"][x[:, 2]],
            params["sb_tab"][x[:, 3]],
        ],
        axis=1,
    )
    h = jnp.maximum(e @ params["w1"] + params["b1"], 0.0)
    h = jnp.maximum(h @ params["w2"] + params["b2"], 0.0)
    return h


# ----------------------------------------------------------------------------
# Main
# ----------------------------------------------------------------------------
if __name__ == "__main__":
    embedding_sizes = [8, 8, 8, 8]           # -> input_dim_count = 32
    mlp_layer_sizes = [32, 16]               # H1, H2
    # dropout_rates = [0.1, 0.2]             # identity at eval time

    key = jax.random.PRNGKey(0)
    keys = jax.random.split(key, 10)

    D = sum(embedding_sizes)
    H1, H2 = mlp_layer_sizes

    params = {
        "sel_tab":  jax.random.normal(keys[0], (4, embedding_sizes[0]), jnp.float32),
        "exp_tab":  jax.random.normal(keys[1], (3, embedding_sizes[1]), jnp.float32),
        "play_tab": jax.random.normal(keys[2], (3, embedding_sizes[2]), jnp.float32),
        "sb_tab":   jax.random.normal(keys[3], (2, embedding_sizes[3]), jnp.float32),
        # Linear layers stored as [in, out] so the kernel computes x @ W + b.
        "w1": jax.random.normal(keys[4], (D, H1), jnp.float32) * (1.0 / jnp.sqrt(D)),
        "b1": jax.random.normal(keys[5], (1, H1), jnp.float32) * 0.01,
        "w2": jax.random.normal(keys[6], (H1, H2), jnp.float32) * (1.0 / jnp.sqrt(H1)),
        "b2": jax.random.normal(keys[7], (1, H2), jnp.float32) * 0.01,
    }

    # One-time offline fold (cached; NOT part of the per-call jit path).
    prepared = prepare_params(params)
    prepared = jax.tree_util.tree_map(jax.block_until_ready, prepared)

    def make_x(batch, k0, k1):
        return jnp.stack(
            [
                jax.random.randint(k0, (batch,), 0, 4),
                jax.random.randint(k1, (batch,), 0, 3),
                jax.random.randint(jax.random.fold_in(k0, 1), (batch,), 0, 3),
                jax.random.randint(jax.random.fold_in(k1, 1), (batch,), 0, 2),
            ],
            axis=1,
        ).astype(jnp.int32)

    # Main run: batch = 2044 exercises the 8-row fold padding.
    x = make_x(2044, keys[8], keys[9])
    out = jax.block_until_ready(agent_encoder(x, prepared))
    ref = agent_encoder_ref(x, params)
    assert out.shape == (2044, H2), out.shape
    assert jnp.allclose(out, ref, atol=3e-2, rtol=3e-2), "mismatch vs reference (B=2044)"

    # Tiny-batch run: exercises the single-step / ragged-fold path.
    x_small = make_x(20, jax.random.fold_in(keys[8], 7), jax.random.fold_in(keys[9], 7))
    out_small = jax.block_until_ready(agent_encoder(x_small, prepared))
    ref_small = agent_encoder_ref(x_small, params)
    assert out_small.shape == (20, H2), out_small.shape
    assert jnp.allclose(out_small, ref_small, atol=3e-2, rtol=3e-2), "mismatch (B=20)"

    print("KERNEL_OK")
</pallas_src>

<mosaic_0001>
module attributes {stable_mosaic.version = 11 : i64} {
  func.func @_agent_encoder_kernel(%arg0: i32, %arg1: memref<256x32xi32, #tpu.memory_space<vmem>>, %arg2: memref<32x96xf32, #tpu.memory_space<vmem>>, %arg3: memref<1x96xf32, #tpu.memory_space<vmem>>, %arg4: memref<96x256xbf16, #tpu.memory_space<vmem>>, %arg5: memref<256x128xbf16, #tpu.memory_space<vmem>>, %arg6: memref<1x128xf32, #tpu.memory_space<vmem>>, %arg7: memref<256x128xf32, #tpu.memory_space<vmem>>) attributes {dimension_semantics = [#tpu.dimension_semantics<parallel>], iteration_bounds = array<i64: 1>, scalar_prefetch = 0 : i64, scratch_operands = 0 : i64, tpu.core_type = #tpu.core_type<tc>, window_params = [{transform_indices = @transform_0, window_bounds = array<i64: 256, 32>}, {pipeline_mode = #tpu.pipeline_mode<synchronous>, transform_indices = @transform_1, window_bounds = array<i64: 32, 96>}, {pipeline_mode = #tpu.pipeline_mode<synchronous>, transform_indices = @transform_2, window_bounds = array<i64: 1, 96>}, {pipeline_mode = #tpu.pipeline_mode<synchronous>, transform_indices = @transform_3, window_bounds = array<i64: 96, 256>}, {pipeline_mode = #tpu.pipeline_mode<synchronous>, transform_indices = @transform_4, window_bounds = array<i64: 256, 128>}, {pipeline_mode = #tpu.pipeline_mode<synchronous>, transform_indices = @transform_5, window_bounds = array<i64: 1, 128>}, {transform_indices = @transform_6, window_bounds = array<i64: 256, 128>}]} {
    %c0 = arith.constant 0 : index
    %c0_0 = arith.constant 0 : index
    %0 = vector.load %arg1[%c0, %c0_0] : memref<256x32xi32, #tpu.memory_space<vmem>>, vector<256x32xi32>
    %1 = arith.sitofp %0 : vector<256x32xi32> to vector<256x32xf32>
    %c0_1 = arith.constant 0 : index
    %c0_2 = arith.constant 0 : index
    %2 = vector.load %arg2[%c0_1, %c0_2] : memref<32x96xf32, #tpu.memory_space<vmem>>, vector<32x96xf32>
    %cst = arith.constant dense<0.000000e+00> : vector<256x96xf32>
    %3 = tpu.matmul %1, %2, %cst {dimension_numbers = #tpu.dot_dimension_numbers<[1], [0], [0], [1], [0, 0, 1, 1], [], []>} : vector<256x32xf32>, vector<32x96xf32>, vector<256x96xf32> -> vector<256x96xf32>
    %c0_3 = arith.constant 0 : index
    %c0_4 = arith.constant 0 : index
    %4 = vector.load %arg3[%c0_3, %c0_4] : memref<1x96xf32, #tpu.memory_space<vmem>>, vector<1x96xf32>
    %5 = vector.broadcast %4 : vector<1x96xf32> to vector<256x96xf32>
    %6 = arith.cmpf oeq, %3, %5 : vector<256x96xf32>
    %7 = arith.extui %6 : vector<256x96xi1> to vector<256x96xi32>
    %8 = arith.sitofp %7 : vector<256x96xi32> to vector<256x96xf32>
    %9 = arith.truncf %8 : vector<256x96xf32> to vector<256x96xbf16>
    %c0_5 = arith.constant 0 : index
    %c0_6 = arith.constant 0 : index
    %10 = vector.load %arg4[%c0_5, %c0_6] : memref<96x256xbf16, #tpu.memory_space<vmem>>, vector<96x256xbf16>
    %cst_7 = arith.constant dense<0.000000e+00> : vector<256x256xf32>
    %11 = tpu.matmul %9, %10, %cst_7 {dimension_numbers = #tpu.dot_dimension_numbers<[1], [0], [0], [1], [0, 0, 1, 1], [], []>} : vector<256x96xbf16>, vector<96x256xbf16>, vector<256x256xf32> -> vector<256x256xf32>
    %cst_8 = arith.constant 0.000000e+00 : f32
    %12 = vector.broadcast %cst_8 : f32 to vector<256x256xf32>
    %13 = arith.maximumf %11, %12 : vector<256x256xf32>
    %14 = arith.truncf %13 : vector<256x256xf32> to vector<256x256xbf16>
    %c0_9 = arith.constant 0 : index
    %c0_10 = arith.constant 0 : index
    %15 = vector.load %arg5[%c0_9, %c0_10] : memref<256x128xbf16, #tpu.memory_space<vmem>>, vector<256x128xbf16>
    %cst_11 = arith.constant dense<0.000000e+00> : vector<256x128xf32>
    %16 = tpu.matmul %14, %15, %cst_11 {dimension_numbers = #tpu.dot_dimension_numbers<[1], [0], [0], [1], [0, 0, 1, 1], [], []>} : vector<256x256xbf16>, vector<256x128xbf16>, vector<256x128xf32> -> vector<256x128xf32>
    %c0_12 = arith.constant 0 : index
    %c0_13 = arith.constant 0 : index
    %17 = vector.load %arg6[%c0_12, %c0_13] : memref<1x128xf32, #tpu.memory_space<vmem>>, vector<1x128xf32>
    %18 = vector.broadcast %17 : vector<1x128xf32> to vector<256x128xf32>
    %19 = arith.addf %16, %18 : vector<256x128xf32>
    %cst_14 = arith.constant 0.000000e+00 : f32
    %20 = vector.broadcast %cst_14 : f32 to vector<256x128xf32>
    %21 = arith.maximumf %19, %20 : vector<256x128xf32>
    %c0_15 = arith.constant 0 : index
    %c0_16 = arith.constant 0 : index
    %22 = vector.load %arg7[%c0_15, %c0_16] : memref<256x128xf32, #tpu.memory_space<vmem>>, vector<256x128xf32>
    tpu.vector_store %arg7[%c0_15, %c0_16], %21 {strides = array<i32>} : memref<256x128xf32, #tpu.memory_space<vmem>>, vector<256x128xf32>,
    return
  }
  func.func @transform_0(%arg0: i32) -> (i32, i32) {
    %c0_i32 = arith.constant 0 : i32
    %c0_i32_0 = arith.constant 0 : i32
    return %arg0, %c0_i32 : i32, i32
  }
  func.func @transform_1(%arg0: i32) -> (i32, i32) {
    %c0_i32 = arith.constant 0 : i32
    %c0_i32_0 = arith.constant 0 : i32
    %c0_i32_1 = arith.constant 0 : i32
    return %c0_i32, %c0_i32_0 : i32, i32
  }
  func.func @transform_2(%arg0: i32) -> (i32, i32) {
    %c0_i32 = arith.constant 0 : i32
    %c0_i32_0 = arith.constant 0 : i32
    %c0_i32_1 = arith.constant 0 : i32
    return %c0_i32, %c0_i32_0 : i32, i32
  }
  func.func @transform_3(%arg0: i32) -> (i32, i32) {
    %c0_i32 = arith.constant 0 : i32
    %c0_i32_0 = arith.constant 0 : i32
    %c0_i32_1 = arith.constant 0 : i32
    return %c0_i32, %c0_i32_0 : i32, i32
  }
  func.func @transform_4(%arg0: i32) -> (i32, i32) {
    %c0_i32 = arith.constant 0 : i32
    %c0_i32_0 = arith.constant 0 : i32
    %c0_i32_1 = arith.constant 0 : i32
    return %c0_i32, %c0_i32_0 : i32, i32
  }
  func.func @transform_5(%arg0: i32) -> (i32, i32) {
    %c0_i32 = arith.constant 0 : i32
    %c0_i32_0 = arith.constant 0 : i32
    %c0_i32_1 = arith.constant 0 : i32
    return %c0_i32, %c0_i32_0 : i32, i32
  }
  func.func @transform_6(%arg0: i32) -> (i32, i32) {
    %c0_i32 = arith.constant 0 : i32
    %c0_i32_0 = arith.constant 0 : i32
    return %arg0, %c0_i32 : i32, i32
  }
}

</mosaic_0001>

<bundles_post_ra>
// kernel: agent_encoder.1
= control target key start
LH: loop header
LB: loop body
LE: loop exit
PB: predicated region body
PF: predicated region fallthrough
CT: control target
= control target key end

     0   :  { %vm92_vm0 = vcmask 261120   ;;  %vm605_vm1 = vcmask 785408   ;;  %s2212_s1 = inlined_call_operand.vmem [shape: f32[32,96], index: 1, kind: input, shape index: {}]   ;;  %s2213_s0 = inlined_call_operand.vmem [shape: s32[256,32], index: 0, kind: input, shape index: {}]   ;;  %s2214_s3 = inlined_call_operand.vmem [shape: bf16[96,256], index: 3, kind: input, shape index: {}]   ;;  %s2215_s2 = inlined_call_operand.vmem [shape: f32[1,96], index: 2, kind: input, shape index: {}]   ;;  %s2216_s4 = inlined_call_operand.vmem [shape: bf16[256,128], index: 4, kind: input, shape index: {}]   ;;  %s2217_s5 = inlined_call_operand.vmem [shape: f32[1,128], index: 5, kind: input, shape index: {}]   ;;  %s2218_s6 = inlined_call_operand.vmem [shape: f32[256,128], index: 6, kind: output, shape index: {}]  }
   0x1   :  { %v88_v0 = vld [vmem:[%s2212_s1] sm:$0xff]  ;;  %v89_v1 = vld [vmem:[%s2212_s1 + $0x8] sm:$0xff]  ;;  %v90_v2 = vld [vmem:[%s2212_s1 + $0x10] sm:$0xff] }
   0x2   :  { %v1621_v3 = vpack.c.bf16 %v89_v1, %v88_v0  ;;  %v91_v4 = vld [vmem:[%s2212_s1 + $0x18] sm:$0xff]  ;;  %v24_v5 = vld [vmem:[%s2213_s0] sm:$0xff]  ;;  %v25_v8 = vld [vmem:[%s2213_s0 + $0x8] sm:$0xff] }
   0x3   :  { %v1625_v6 = vpack.c.bf16 %v91_v4, %v90_v2  ;;  %v56_v7 = vcvt.s32.f32 %v24_v5  ;;  %v26_v9 = vld [vmem:[%s2213_s0 + $0x10] sm:$0xff]  ;;  %v40_v10 = vld [vmem:[%s2213_s0 + $0x80] sm:$0xff]  ;;  %v57_v11 = vcvt.s32.f32 %v25_v8  ;;  %v41_v13 = vld [vmem:[%s2213_s0 + $0x88] sm:$0xff] }
   0x4   :  { %1622 = vmatprep.subr.bf16.mxu0 %v1621_v3  ;;  %1629 = vmatprep.subr.bf16.mxu1 %v1621_v3  ;;  %v72_v12 = vcvt.s32.f32 %v40_v10  ;;  %v42_v14 = vld [vmem:[%s2213_s0 + $0x90] sm:$0xff]  ;;  %v58_v15 = vcvt.s32.f32 %v26_v9  ;;  %v27_v16 = vld [vmem:[%s2213_s0 + $0x18] sm:$0xff]  ;;  %v73_v17 = vcvt.s32.f32 %v41_v13  ;;  %v28_v18 = vld [vmem:[%s2213_s0 + $0x20] sm:$0xff] }
   0x5   :  { %1624 = vmatpush3.bf16.msra.mxu0 %v1621_v3  ;;  %1573 = vmatprep.mubr.msk.f32.mxu0 %vm92_vm0, %v56_v7  ;;  %v74_v19 = vcvt.s32.f32 %v42_v14  ;;  %v43_v20 = vld [vmem:[%s2213_s0 + $0x98] sm:$0xff]  ;;  %v44_v21 = vld [vmem:[%s2213_s0 + $0xa0] sm:$0xff]  ;;  %v59_v22 = vcvt.s32.f32 %v27_v16  ;;  %v29_v23 = vld [vmem:[%s2213_s0 + $0x28] sm:$0xff]  ;;  %v60_v26 = vcvt.s32.f32 %v28_v18  ;;  %v1669_v18 = vmov 0  }
   0x6   :  { %1626 = vmatprep.subr.bf16.mxu0 %v1625_v6  ;;  %1631 = vmatpush3.bf16.msra.mxu1 %v1621_v3  ;;  %v30_v24 = vld [vmem:[%s2213_s0 + $0x30] sm:$0xff]  ;;  %v45_v25 = vld [vmem:[%s2213_s0 + $0xa8] sm:$0xff]  ;;  %v75_v27 = vcvt.s32.f32 %v43_v20  ;;  %v76_v29 = vcvt.s32.f32 %v44_v21  ;;  %v61_v33 = vcvt.s32.f32 %v29_v23  ;;  %v31_v34 = vld [vmem:[%s2213_s0 + $0x38] sm:$0xff] }
   0x7   :  { %1630 = vmatprep.subr.bf16.mxu1 %v1625_v6  ;;  %1597 = vmatprep.mubr.msk.f32.mxu1 %vm92_vm0, %v72_v12  ;;  %v1635_v28 = vld [vmem:[%s2214_s3] ss:$8 sps:$4 sm:$0xff]   ;;  %v1637_v30 = vld [vmem:[%s2214_s3 + $0x4] ss:$8 sps:$4 sm:$0xff]   ;;  %v46_v31 = vld [vmem:[%s2213_s0 + $0xb0] sm:$0xff]  ;;  %v62_v36 = vcvt.s32.f32 %v30_v24  ;;  %v77_v37 = vcvt.s32.f32 %v45_v25  ;;  %v63_v43 = vcvt.s32.f32 %v31_v34  ;;  %v1670_v25 = vmov 0.0  }
   0x8   :  { %v1640_v32 = vld [vmem:[%s2214_s3 + $0x14] ss:$8 sps:$4 sm:$0xff]   ;;  %v32_v35 = vld [vmem:[%s2213_s0 + $0x40] sm:$0xff]  ;;  %v78_v39 = vcvt.s32.f32 %v46_v31  ;;  %v1638_v40 = vld [vmem:[%s2214_s3 + $0x10] ss:$8 sps:$4 sm:$0xff]  }
   0x9   :  { %1628 = vmatpush3.bf16.msra.mxu0 %v1625_v6  ;;  %v47_v38 = vld [vmem:[%s2213_s0 + $0xb8] sm:$0xff]  ;;  %v48_v41 = vld [vmem:[%s2213_s0 + $0xc0] sm:$0xff]  ;;  %v64_v44 = vcvt.s32.f32 %v32_v35  ;;  %v33_v45 = vld [vmem:[%s2213_s0 + $0x48] sm:$0xff] }
   0xa   :  { %1632 = vmatpush3.bf16.msra.mxu1 %v1625_v6  ;;  %v1643_v42 = vld [vmem:[%s2214_s3 + $0x24] ss:$8 sps:$4 sm:$0xff]   ;;  %v79_v46 = vcvt.s32.f32 %v47_v38  ;;  %v34_v47 = vld [vmem:[%s2213_s0 + $0x50] sm:$0xff]  ;;  %v80_v48 = vcvt.s32.f32 %v48_v41  ;;  %v1641_v50 = vld [vmem:[%s2214_s3 + $0x20] ss:$8 sps:$4 sm:$0xff]   ;;  %v65_v53 = vcvt.s32.f32 %v33_v45 }
   0xb   :  { %654 = vmatprep.subr.bf16.mxu1 %v1637_v30  ;;  %v49_v49 = vld [vmem:[%s2213_s0 + $0xc8] sm:$0xff]  ;;  %v50_v51 = vld [vmem:[%s2213_s0 + $0xd0] sm:$0xff]  ;;  %v66_v54 = vcvt.s32.f32 %v34_v47  ;;  %v35_v55 = vld [vmem:[%s2213_s0 + $0x58] sm:$0xff] }
   0xc   :  { %1574 = vmatmul.mubr.msk.f32.vlgmr.msra.gmra.mrb[0].mxu0 %vm92_vm0, %v57_v11  ;;  %v1646_v52 = vld [vmem:[%s2214_s3 + $0x34] ss:$8 sps:$4 sm:$0xff]   ;;  %v81_v56 = vcvt.s32.f32 %v49_v49  ;;  %v36_v57 = vld [vmem:[%s2213_s0 + $0x60] sm:$0xff]  ;;  %v82_v58 = vcvt.s32.f32 %v50_v51  ;;  %v1644_v60 = vld [vmem:[%s2214_s3 + $0x30] ss:$8 sps:$4 sm:$0xff]   ;;  %v67_v63 = vcvt.s32.f32 %v35_v55 }
   0xd   :  { %1576 = vmatprep.mubr.msk.f32.mxu0 %vm92_vm0, %v58_v15  ;;  %1598 = vmatmul.mubr.msk.f32.vlgmr.msra.gmra.mrb[0].mxu1 %vm92_vm0, %v73_v17  ;;  %v51_v59 = vld [vmem:[%s2213_s0 + $0xd8] sm:$0xff]  ;;  %v52_v61 = vld [vmem:[%s2213_s0 + $0xe0] sm:$0xff]  ;;  %v68_v0 = vcvt.s32.f32 %v36_v57  ;;  %v37_v1 = vld [vmem:[%s2213_s0 + $0x68] sm:$0xff] }
   0xe   :  { %1600 = vmatprep.mubr.msk.f32.mxu1 %vm92_vm0, %v74_v19  ;;  %655 = vmatpush1.bf16.msra.mxu1 %v1635_v28  ;;  %v1649_v62 = vld [vmem:[%s2214_s3 + $0x44] ss:$8 sps:$4 sm:$0xff]   ;;  %v83_v2 = vcvt.s32.f32 %v51_v59  ;;  %v38_v3 = vld [vmem:[%s2213_s0 + $0x70] sm:$0xff]  ;;  %v84_v4 = vcvt.s32.f32 %v52_v61  ;;  %v1647_v6 = vld [vmem:[%s2214_s3 + $0x40] ss:$8 sps:$4 sm:$0xff]   ;;  %v69_v8 = vcvt.s32.f32 %v37_v1 }
   0xf   :  { %656 = vmatprep.subr.bf16.mxu1 %v1640_v32  ;;  %v53_v5 = vld [vmem:[%s2213_s0 + $0xe8] sm:$0xff]  ;;  %v54_v7 = vld [vmem:[%s2213_s0 + $0xf0] sm:$0xff]  ;;  %v70_v9 = vcvt.s32.f32 %v38_v3  ;;  %v39_v10 = vld [vmem:[%s2213_s0 + $0x78] sm:$0xff] }
  0x10   :  { %1577 = vmatmul.mubr.msk.f32.gmra.mrb[2].mxu0 %vm92_vm0, %v59_v22  ;;  %v85_v11 = vcvt.s32.f32 %v53_v5  ;;  %v86_v12 = vcvt.s32.f32 %v54_v7  ;;  %v55_v13 = vld [vmem:[%s2213_s0 + $0xf8] sm:$0xff]  ;;  %v71_v14 = vcvt.s32.f32 %v39_v10  ;;  %v1886_v19 = vld [vmem:[%s2215_s2] ss:$0 sm:$0xff]  ;;  %v1655_v28 = vld [vmem:[%s2216_s4 + $0x48] sm:$0xff]  }
  0x11   :  { %1579 = vmatprep.mubr.msk.f32.mxu0 %vm92_vm0, %v60_v26  ;;  %1601 = vmatmul.mubr.msk.f32.gmra.mrb[2].mxu1 %vm92_vm0, %v75_v27  ;;  %v87_v15 = vcvt.s32.f32 %v55_v13  ;;  %v1652_v16 = vld [vmem:[%s2214_s3 + $0x54] ss:$8 sps:$4 sm:$0xff]   ;;  %v1650_v17 = vld [vmem:[%s2214_s3 + $0x50] ss:$8 sps:$4 sm:$0xff]   ;;  %v1653_v20 = vld [vmem:[%s2216_s4 + $0x40] sm:$0xff]  }
  0x12   :  { %1603 = vmatprep.mubr.msk.f32.mxu1 %vm92_vm0, %v76_v29  ;;  %657 = vmatpush1.bf16.msra.mxu1 %v1638_v40  ;;  %v1654_v22 = vld [vmem:[%s2216_s4] sm:$0xff]   ;;  %v1656_v29 = vld [vmem:[%s2216_s4 + $0x8] sm:$0xff]   ;;  %v1657_v35 = vld [vmem:[%s2216_s4 + $0x50] sm:$0xff]  }
  0x13   :  { %658 = vmatprep.subr.bf16.mxu1 %v1643_v42  ;;  %1453 = vmatprep.subr.bf16.mxu0 %v1653_v20  ;;  %v1660_v51 = vld [vmem:[%s2216_s4 + $0x18] sm:$0xff]   ;;  %v1664_v13 = vld [vmem:[%s2216_s4 + $0x28] sm:$0xff]  }
  0x14   :  { %1580 = vmatmul.mubr.msk.f32.gmra.mrb[4].mxu0 %vm92_vm0, %v61_v33 }
  0x15   :  { %1582 = vmatprep.mubr.msk.f32.mxu0 %vm92_vm0, %v62_v36  ;;  %1604 = vmatmul.mubr.msk.f32.gmra.mrb[4].mxu1 %vm92_vm0, %v77_v37  ;;  %v1658_v36 = vld [vmem:[%s2216_s4 + $0x10] sm:$0xff]  }
  0x16   :  { %1606 = vmatprep.mubr.msk.f32.mxu1 %vm92_vm0, %v78_v39  ;;  %659 = vmatpush1.bf16.msra.mxu1 %v1641_v50 }
  0x17   :  { %660 = vmatprep.subr.bf16.mxu1 %v1646_v52  ;;  %1454 = vmatpush3.bf16.msra.mxu0 %v1654_v22  ;;  %v1661_v52 = vld [vmem:[%s2216_s4 + $0x60] sm:$0xff]  }
  0x18   :  { %1583 = vmatmul.mubr.msk.f32.gmra.mrb[6].mxu0 %vm92_vm0, %v63_v43  ;;  %1455 = vmatprep.subr.bf16.mxu0 %v1655_v28 }
  0x19   :  { %1585 = vmatprep.mubr.msk.f32.mxu0 %vm92_vm0, %v64_v44  ;;  %1607 = vmatmul.mubr.msk.f32.gmra.mrb[6].mxu1 %vm92_vm0, %v79_v46  ;;  %v1659_v44 = vld [vmem:[%s2216_s4 + $0x58] sm:$0xff]  }
  0x1a   :  { %1609 = vmatprep.mubr.msk.f32.mxu1 %vm92_vm0, %v80_v48  ;;  %661 = vmatpush1.bf16.msra.mxu1 %v1644_v60  ;;  %v1662_v60 = vld [vmem:[%s2216_s4 + $0x20] sm:$0xff]  }
  0x1b   :  { %662 = vmatprep.subr.bf16.mxu1 %v1649_v62  ;;  %1456 = vmatpush3.bf16.msra.mxu0 %v1656_v29 }
  0x1c   :  { %1586 = vmatmul.mubr.msk.f32.gmra.mrb[8].mxu0 %vm92_vm0, %v65_v53  ;;  %1457 = vmatprep.subr.bf16.mxu0 %v1657_v35 }
  0x1d   :  { %1588 = vmatprep.mubr.msk.f32.mxu0 %vm92_vm0, %v66_v54  ;;  %1610 = vmatmul.mubr.msk.f32.gmra.mrb[8].mxu1 %vm92_vm0, %v81_v56 }
  0x1e   :  { %1612 = vmatprep.mubr.msk.f32.mxu1 %vm92_vm0, %v82_v58  ;;  %663 = vmatpush1.bf16.msra.mxu1 %v1647_v6 }
  0x1f   :  { %664 = vmatprep.subr.bf16.mxu1 %v1652_v16  ;;  %1458 = vmatpush3.bf16.msra.mxu0 %v1658_v36 }
  0x20   :  { %1589 = vmatmul.mubr.msk.f32.gmra.mrb[10].mxu0 %vm92_vm0, %v67_v63  ;;  %1459 = vmatprep.subr.bf16.mxu0 %v1659_v44 }
  0x21   :  { %1591 = vmatprep.mubr.msk.f32.mxu0 %vm92_vm0, %v68_v0  ;;  %1613 = vmatmul.mubr.msk.f32.gmra.mrb[10].mxu1 %vm92_vm0, %v83_v2  ;;  %v1663_v0 = vld [vmem:[%s2216_s4 + $0x68] sm:$0xff]  }
  0x22   :  { %1615 = vmatprep.mubr.msk.f32.mxu1 %vm92_vm0, %v84_v4  ;;  %665 = vmatpush1.bf16.msra.mxu1 %v1650_v17 }
  0x23   :  { %1460 = vmatpush3.bf16.msra.mxu0 %v1660_v51 }
  0x24   :  { %1592 = vmatmul.mubr.msk.f32.gmra.mrb[12].mxu0 %vm92_vm0, %v69_v8  ;;  %1461 = vmatprep.subr.bf16.mxu0 %v1661_v52 }
  0x25   :  { %1594 = vmatprep.mubr.msk.f32.mxu0 %vm92_vm0, %v70_v9  ;;  %1616 = vmatmul.mubr.msk.f32.gmra.mrb[12].mxu1 %vm92_vm0, %v85_v11 }
  0x26   :  { %1618 = vmatprep.mubr.msk.f32.mxu1 %vm92_vm0, %v86_v12 }
  0x27   :  { %1462 = vmatpush3.bf16.msra.mxu0 %v1662_v60 }
  0x28   :  { %1595 = vmatmul.mubr.msk.f32.gmra.mrb[14].mxu0 %vm92_vm0, %v71_v14  ;;  %1463 = vmatprep.subr.bf16.mxu0 %v1663_v0 }
  0x29   :  { %1619 = vmatmul.mubr.msk.f32.gmra.mrb[14].mxu1 %vm92_vm0, %v87_v15 }
  0x2a   :  { %686 = vmatprep.mubr.bf16.mxu1 %v1669_v18 }
  0x2b   :  { %1464 = vmatpush3.bf16.msra.mxu0 %v1664_v13 }
  0xdf   :  { %v1575_v21 = vpop.f32.mrb[0].mxu0 }
  0xe0   :  { %vm422_vm2 = vcmp.eq.f32.partialorder %v1575_v21, %v1886_v19  ;;  %v255_v23 = vpop.f32.mrb[1].mxu0  ;;  %v1599_v24 = vpop.f32.mrb[0].mxu1 }
  0xe1   :  { %v1341_v26 = vsel %vm422_vm2, 1.0, %v1670_v25  ;;  %vm421_vm3 = vcmp.eq.f32.partialorder %v255_v23, %v1886_v19  ;;  %vm438_vm4 = vcmp.eq.f32.partialorder %v1599_v24, %v1886_v19  ;;  %v335_v27 = vpop.f32.mrb[1].mxu1 }
  0xe2   :  { %v1340_v30 = vsel %vm421_vm3, 1.0, %v1670_v25  ;;  %v1906_v31 = vsel %vm438_vm4, 1.0, %v1670_v25  ;;  %vm437_vm5 = vcmp.eq.f32.partialorder %v335_v27, %v1886_v19 }
  0xe3   :  { %v517_v32 = vpack.c.bf16 %v1341_v26, %v1340_v30  ;;  %v1578_v33 = vpop.f32.mrb[2].mxu0  ;;  %v1910_v34 = vsel %vm437_vm5, 1.0, %v1670_v25 }
  0xe4   :  { %vm424_vm6 = vcmp.eq.f32.partialorder %v1578_v33, %v1886_v19  ;;  %v265_v37 = vpop.f32.mrb[3].mxu0  ;;  %v525_v38 = vpack.c.bf16 %v1906_v31, %v1910_v34  ;;  %v1602_v39 = vpop.f32.mrb[2].mxu1  ;;  %v1667_v31 = vld [vmem:[%s2216_s4 + $0x78] sm:$0xff]  }
  0xe5   :  { %1384 = vmatmul.mubr.msk.bf16.vlgmr.msra.gmra.mrb[16].mxu1 %vm605_vm1, %v517_v32  ;;  %v1343_v40 = vsel %vm424_vm6, 1.0, %v1670_v25  ;;  %vm423_vm7 = vcmp.eq.f32.partialorder %v265_v37, %v1886_v19  ;;  %vm440_vm8 = vcmp.eq.f32.partialorder %v1602_v39, %v1886_v19  ;;  %v345_v41 = vpop.f32.mrb[3].mxu1  ;;  %v1668_v34 = vld [vmem:[%s2216_s4 + $0x38] sm:$0xff]  }
  0xe6   :  { %v1342_v42 = vsel %vm423_vm7, 1.0, %v1670_v25  ;;  %696 = vmatprep.mubr.bf16.mxu1 %v1669_v18  ;;  %v1928_v43 = vsel %vm440_vm8, 1.0, %v1670_v25  ;;  %vm439_vm9 = vcmp.eq.f32.partialorder %v345_v41, %v1886_v19 }
  0xe7   :  { %v518_v45 = vpack.c.bf16 %v1343_v40, %v1342_v42  ;;  %v1581_v46 = vpop.f32.mrb[4].mxu0  ;;  %v1935_v47 = vsel %vm439_vm9, 1.0, %v1670_v25 }
  0xe8   :  { %vm426_vm10 = vcmp.eq.f32.partialorder %v1581_v46, %v1886_v19  ;;  %v275_v48 = vpop.f32.mrb[5].mxu0  ;;  %v526_v49 = vpack.c.bf16 %v1928_v43, %v1935_v47  ;;  %v1605_v50 = vpop.f32.mrb[4].mxu1 }
  0xe9   :  { %v1345_v53 = vsel %vm426_vm10, 1.0, %v1670_v25  ;;  %vm425_vm11 = vcmp.eq.f32.partialorder %v275_v48, %v1886_v19  ;;  %vm442_vm12 = vcmp.eq.f32.partialorder %v1605_v50, %v1886_v19  ;;  %v355_v54 = vpop.f32.mrb[5].mxu1 }
  0xea   :  { %v1344_v55 = vsel %vm425_vm11, 1.0, %v1670_v25  ;;  %v1951_v56 = vsel %vm442_vm12, 1.0, %v1670_v25  ;;  %vm441_vm13 = vcmp.eq.f32.partialorder %v355_v54, %v1886_v19 }
  0xeb   :  { %v519_v57 = vpack.c.bf16 %v1345_v53, %v1344_v55  ;;  %v1584_v58 = vpop.f32.mrb[6].mxu0  ;;  %v1955_v59 = vsel %vm441_vm13, 1.0, %v1670_v25 }
  0xec   :  { %vm428_vm14 = vcmp.eq.f32.partialorder %v1584_v58, %v1886_v19  ;;  %v285_v61 = vpop.f32.mrb[7].mxu0  ;;  %v527_v62 = vpack.c.bf16 %v1951_v56, %v1955_v59  ;;  %v1608_v63 = vpop.f32.mrb[6].mxu1 }
  0xed   :  { %1385 = vmatmul.mubr.msk.bf16.gmra.mrb[20].mxu1 %vm605_vm1, %v518_v45  ;;  %v1968_v1 = vsel %vm428_vm14, 1.0, %v1670_v25  ;;  %vm427_vm15 = vcmp.eq.f32.partialorder %v285_v61, %v1886_v19  ;;  %vm444_vm0 = vcmp.eq.f32.partialorder %v1608_v63, %v1886_v19  ;;  %v365_v2 = vpop.f32.mrb[7].mxu1 }
  0xee   :  { %706 = vmatprep.mubr.bf16.mxu1 %v1669_v18  ;;  %v1346_v3 = vsel %vm427_vm15, 1.0, %v1670_v25  ;;  %v1975_v4 = vsel %vm444_vm0, 1.0, %v1670_v25  ;;  %vm443_vm2 = vcmp.eq.f32.partialorder %v365_v2, %v1886_v19 }
  0xef   :  { %v520_v5 = vpack.c.bf16 %v1968_v1, %v1346_v3  ;;  %v1587_v6 = vpop.f32.mrb[8].mxu0  ;;  %v1980_v7 = vsel %vm443_vm2, 1.0, %v1670_v25 }
  0xf0   :  { %vm430_vm3 = vcmp.eq.f32.partialorder %v1587_v6, %v1886_v19  ;;  %v295_v8 = vpop.f32.mrb[9].mxu0  ;;  %v528_v9 = vpack.c.bf16 %v1975_v4, %v1980_v7  ;;  %v1611_v10 = vpop.f32.mrb[8].mxu1 }
  0xf1   :  { %v1349_v11 = vsel %vm430_vm3, 1.0, %v1670_v25  ;;  %vm429_vm4 = vcmp.eq.f32.partialorder %v295_v8, %v1886_v19  ;;  %vm446_vm5 = vcmp.eq.f32.partialorder %v1611_v10, %v1886_v19  ;;  %v375_v12 = vpop.f32.mrb[9].mxu1 }
  0xf2   :  { %v1348_v14 = vsel %vm429_vm4, 1.0, %v1670_v25  ;;  %v1993_v15 = vsel %vm446_vm5, 1.0, %v1670_v25  ;;  %vm445_vm6 = vcmp.eq.f32.partialorder %v375_v12, %v1886_v19 }
  0xf3   :  { %v521_v16 = vpack.c.bf16 %v1349_v11, %v1348_v14  ;;  %v1590_v17 = vpop.f32.mrb[10].mxu0  ;;  %v1997_v20 = vsel %vm445_vm6, 1.0, %v1670_v25 }
  0xf4   :  { %vm432_vm7 = vcmp.eq.f32.partialorder %v1590_v17, %v1886_v19  ;;  %v305_v21 = vpop.f32.mrb[11].mxu0  ;;  %v529_v22 = vpack.c.bf16 %v1993_v15, %v1997_v20  ;;  %v1614_v23 = vpop.f32.mrb[10].mxu1 }
  0xf5   :  { %1386 = vmatmul.mubr.msk.bf16.gmra.mrb[24].mxu1 %vm605_vm1, %v519_v57  ;;  %v1351_v24 = vsel %vm432_vm7, 1.0, %v1670_v25  ;;  %vm431_vm8 = vcmp.eq.f32.partialorder %v305_v21, %v1886_v19  ;;  %vm448_vm9 = vcmp.eq.f32.partialorder %v1614_v23, %v1886_v19  ;;  %v385_v26 = vpop.f32.mrb[11].mxu1 }
  0xf6   :  { %716 = vmatprep.mubr.bf16.mxu1 %v1669_v18  ;;  %v1350_v27 = vsel %vm431_vm8, 1.0, %v1670_v25  ;;  %v1367_v28 = vsel %vm448_vm9, 1.0, %v1670_v25  ;;  %vm447_vm10 = vcmp.eq.f32.partialorder %v385_v26, %v1886_v19 }
  0xf7   :  { %v522_v29 = vpack.c.bf16 %v1351_v24, %v1350_v27  ;;  %v1593_v30 = vpop.f32.mrb[12].mxu0  ;;  %v1366_v32 = vsel %vm447_vm10, 1.0, %v1670_v25 }
  0xf8   :  { %vm434_vm11 = vcmp.eq.f32.partialorder %v1593_v30, %v1886_v19  ;;  %v315_v33 = vpop.f32.mrb[13].mxu0  ;;  %v530_v35 = vpack.c.bf16 %v1367_v28, %v1366_v32  ;;  %v1617_v36 = vpop.f32.mrb[12].mxu1 }
  0xf9   :  { %v1353_v37 = vsel %vm434_vm11, 1.0, %v1670_v25  ;;  %vm433_vm12 = vcmp.eq.f32.partialorder %v315_v33, %v1886_v19  ;;  %vm450_vm13 = vcmp.eq.f32.partialorder %v1617_v36, %v1886_v19  ;;  %v395_v39 = vpop.f32.mrb[13].mxu1 }
  0xfa   :  { %v1352_v40 = vsel %vm433_vm12, 1.0, %v1670_v25  ;;  %v1369_v41 = vsel %vm450_vm13, 1.0, %v1670_v25  ;;  %vm449_vm14 = vcmp.eq.f32.partialorder %v395_v39, %v1886_v19 }
  0xfb   :  { %v523_v42 = vpack.c.bf16 %v1353_v37, %v1352_v40  ;;  %v1596_v44 = vpop.f32.mrb[14].mxu0  ;;  %v1368_v45 = vsel %vm449_vm14, 1.0, %v1670_v25 }
  0xfc   :  { %vm436_vm15 = vcmp.eq.f32.partialorder %v1596_v44, %v1886_v19  ;;  %v325_v46 = vpop.f32.mrb[15].mxu0  ;;  %v531_v48 = vpack.c.bf16 %v1369_v41, %v1368_v45  ;;  %v1620_v50 = vpop.f32.mrb[14].mxu1 }
  0xfd   :  { %1387 = vmatmul.mubr.msk.bf16.gmra.mrb[28].mxu1 %vm605_vm1, %v520_v5  ;;  %v1355_v51 = vsel %vm436_vm15, 1.0, %v1670_v25  ;;  %vm435_vm0 = vcmp.eq.f32.partialorder %v325_v46, %v1886_v19  ;;  %vm452_vm2 = vcmp.eq.f32.partialorder %v1620_v50, %v1886_v19  ;;  %v405_v52 = vpop.f32.mrb[15].mxu1 }
  0xfe   :  { %726 = vmatprep.mubr.bf16.mxu1 %v1669_v18  ;;  %v1354_v53 = vsel %vm435_vm0, 1.0, %v1670_v25  ;;  %v1371_v54 = vsel %vm452_vm2, 1.0, %v1670_v25  ;;  %vm451_vm3 = vcmp.eq.f32.partialorder %v405_v52, %v1886_v19  ;;  %v1665_v19 = vld [vmem:[%s2216_s4 + $0x70] sm:$0xff]  }
  0xff   :  { %v524_v55 = vpack.c.bf16 %v1355_v51, %v1354_v53  ;;  %v1370_v57 = vsel %vm451_vm3, 1.0, %v1670_v25  ;;  %v1666_v25 = vld [vmem:[%s2216_s4 + $0x30] sm:$0xff]   ;;  %1465 = vmatprep.subr.bf16.mxu0 %v1665_v19 }
 0x100   :  { %v532_v58 = vpack.c.bf16 %v1371_v54, %v1370_v57  ;;  %1466 = vmatpush3.bf16.msra.mxu0 %v1666_v25 }
 0x101   :  { %1467 = vmatprep.subr.bf16.mxu0 %v1667_v31 }
 0x104   :  { %1468 = vmatpush3.bf16.msra.mxu0 %v1668_v34 }
 0x105   :  { %1388 = vmatmul.mubr.msk.bf16.gmra.mrb[32].mxu1 %vm605_vm1, %v521_v16 }
 0x106   :  { %736 = vmatprep.mubr.bf16.mxu1 %v1669_v18 }
 0x10d   :  { %1389 = vmatmul.mubr.msk.bf16.gmra.mrb[36].mxu1 %vm605_vm1, %v522_v29 }
 0x10e   :  { %746 = vmatprep.mubr.bf16.mxu1 %v1669_v18 }
 0x115   :  { %1390 = vmatmul.mubr.msk.bf16.gmra.mrb[40].mxu1 %vm605_vm1, %v523_v42 }
 0x116   :  { %756 = vmatprep.mubr.bf16.mxu1 %v1669_v18 }
 0x11d   :  { %1391 = vmatmul.mubr.msk.bf16.gmra.mrb[44].mxu1 %vm605_vm1, %v524_v55 }
 0x11e   :  { %766 = vmatprep.mubr.bf16.mxu1 %v1669_v18 }
 0x125   :  { %1392 = vmatmul.mubr.msk.bf16.gmra.mrb[48].mxu1 %vm605_vm1, %v525_v38 }
 0x126   :  { %776 = vmatprep.mubr.bf16.mxu1 %v1669_v18 }
 0x12d   :  { %1393 = vmatmul.mubr.msk.bf16.gmra.mrb[52].mxu1 %vm605_vm1, %v526_v49 }
 0x12e   :  { %786 = vmatprep.mubr.bf16.mxu1 %v1669_v18 }
 0x135   :  { %1394 = vmatmul.mubr.msk.bf16.gmra.mrb[56].mxu1 %vm605_vm1, %v527_v62 }
 0x136   :  { %796 = vmatprep.mubr.bf16.mxu1 %v1669_v18 }
 0x13d   :  { %1395 = vmatmul.mubr.msk.bf16.gmra.mrb[60].mxu1 %vm605_vm1, %v528_v9 }
 0x13e   :  { %806 = vmatprep.mubr.bf16.mxu1 %v1669_v18 }
 0x145   :  { %1396 = vmatmul.mubr.msk.bf16.gmra.mrb[64].mxu1 %vm605_vm1, %v529_v22 }
 0x146   :  { %816 = vmatprep.mubr.bf16.mxu1 %v1669_v18 }
 0x14d   :  { %1397 = vmatmul.mubr.msk.bf16.gmra.mrb[68].mxu1 %vm605_vm1, %v530_v35 }
 0x14e   :  { %826 = vmatprep.mubr.bf16.mxu1 %v1669_v18 }
 0x155   :  { %1398 = vmatmul.mubr.msk.bf16.gmra.mrb[72].mxu1 %vm605_vm1, %v531_v48 }
 0x156   :  { %836 = vmatprep.mubr.bf16.mxu1 %v1669_v18 }
 0x15d   :  { %1399 = vmatmul.mubr.msk.bf16.gmra.mrb[76].mxu1 %vm605_vm1, %v532_v58 }
 0x1b8   :  { %v688_v38 = vpop.f32.mrb[16].mxu1 }
 0x1b9   :  { %v690_v43 = vpop.f32.mrb[17].mxu1  ;;  %v847_v49 = vmax.f32 %v688_v38, 0.0 }
 0x1ba   :  { %v692_v47 = vpop.f32.mrb[18].mxu1  ;;  %v848_v60 = vmax.f32 %v690_v43, 0.0 }
 0x1bb   :  { %v849_v56 = vmax.f32 %v692_v47, 0.0  ;;  %v694_v59 = vpop.f32.mrb[19].mxu1 }
 0x1bc   :  { %v850_v61 = vmax.f32 %v694_v59, 0.0 }
 0x1bd   :  { %v911_v62 = vpack.c.bf16 %v849_v56, %v847_v49 }
 0x1be   :  { %v912_v63 = vpack.c.bf16 %v850_v61, %v848_v60 }
 0x1c0   :  { %v698_v0 = vpop.f32.mrb[20].mxu1  ;;  %1110 = vmatprep.mubr.bf16.mxu0 %v912_v63 }
 0x1c1   :  { %v700_v1 = vpop.f32.mrb[21].mxu1  ;;  %1111 = vmatmul.mubr.bf16.vlgmr.msra.gmra.mrb[16].mxu0 %v911_v62  ;;  %v851_v3 = vmax.f32 %v698_v0, 0.0 }
 0x1c2   :  { %v702_v2 = vpop.f32.mrb[22].mxu1  ;;  %v852_v5 = vmax.f32 %v700_v1, 0.0 }
 0x1c3   :  { %v853_v4 = vmax.f32 %v702_v2, 0.0  ;;  %v704_v18 = vpop.f32.mrb[23].mxu1 }
 0x1c4   :  { %v854_v6 = vmax.f32 %v704_v18, 0.0 }
 0x1c5   :  { %v913_v7 = vpack.c.bf16 %v853_v4, %v851_v3 }
 0x1c6   :  { %v914_v8 = vpack.c.bf16 %v854_v6, %v852_v5 }
 0x1c8   :  { %v708_v9 = vpop.f32.mrb[24].mxu1  ;;  %1118 = vmatprep.mubr.bf16.mxu0 %v914_v8 }
 0x1c9   :  { %v710_v10 = vpop.f32.mrb[25].mxu1  ;;  %1119 = vmatmul.mubr.bf16.gmra.mrb[20].mxu0 %v913_v7  ;;  %v855_v12 = vmax.f32 %v708_v9, 0.0 }
 0x1ca   :  { %v712_v11 = vpop.f32.mrb[26].mxu1  ;;  %v856_v15 = vmax.f32 %v710_v10, 0.0 }
 0x1cb   :  { %v857_v13 = vmax.f32 %v712_v11, 0.0  ;;  %v714_v14 = vpop.f32.mrb[27].mxu1 }
 0x1cc   :  { %v858_v16 = vmax.f32 %v714_v14, 0.0 }
 0x1cd   :  { %v915_v17 = vpack.c.bf16 %v857_v13, %v855_v12 }
 0x1ce   :  { %v916_v20 = vpack.c.bf16 %v858_v16, %v856_v15 }
 0x1d0   :  { %v718_v21 = vpop.f32.mrb[28].mxu1  ;;  %1126 = vmatprep.mubr.bf16.mxu0 %v916_v20 }
 0x1d1   :  { %v720_v22 = vpop.f32.mrb[29].mxu1  ;;  %1127 = vmatmul.mubr.bf16.gmra.mrb[24].mxu0 %v915_v17  ;;  %v859_v24 = vmax.f32 %v718_v21, 0.0 }
 0x1d2   :  { %v722_v23 = vpop.f32.mrb[30].mxu1  ;;  %v860_v28 = vmax.f32 %v720_v22, 0.0 }
 0x1d3   :  { %v861_v26 = vmax.f32 %v722_v23, 0.0  ;;  %v724_v27 = vpop.f32.mrb[31].mxu1 }
 0x1d4   :  { %v862_v29 = vmax.f32 %v724_v27, 0.0 }
 0x1d5   :  { %v917_v30 = vpack.c.bf16 %v861_v26, %v859_v24 }
 0x1d6   :  { %v918_v32 = vpack.c.bf16 %v862_v29, %v860_v28 }
 0x1d8   :  { %v728_v33 = vpop.f32.mrb[32].mxu1  ;;  %1134 = vmatprep.mubr.bf16.mxu0 %v918_v32 }
 0x1d9   :  { %v730_v35 = vpop.f32.mrb[33].mxu1  ;;  %1135 = vmatmul.mubr.bf16.gmra.mrb[28].mxu0 %v917_v30  ;;  %v863_v37 = vmax.f32 %v728_v33, 0.0 }
 0x1da   :  { %v732_v36 = vpop.f32.mrb[34].mxu1  ;;  %v864_v41 = vmax.f32 %v730_v35, 0.0 }
 0x1db   :  { %v865_v39 = vmax.f32 %v732_v36, 0.0  ;;  %v734_v40 = vpop.f32.mrb[35].mxu1 }
 0x1dc   :  { %v866_v42 = vmax.f32 %v734_v40, 0.0 }
 0x1dd   :  { %v919_v44 = vpack.c.bf16 %v865_v39, %v863_v37 }
 0x1de   :  { %v920_v45 = vpack.c.bf16 %v866_v42, %v864_v41 }
 0x1e0   :  { %v738_v46 = vpop.f32.mrb[36].mxu1  ;;  %1142 = vmatprep.mubr.bf16.mxu0 %v920_v45 }
 0x1e1   :  { %v740_v48 = vpop.f32.mrb[37].mxu1  ;;  %1143 = vmatmul.mubr.bf16.gmra.mrb[32].mxu0 %v919_v44  ;;  %v867_v51 = vmax.f32 %v738_v46, 0.0 }
 0x1e2   :  { %v742_v50 = vpop.f32.mrb[38].mxu1  ;;  %v868_v54 = vmax.f32 %v740_v48, 0.0 }
 0x1e3   :  { %v869_v52 = vmax.f32 %v742_v50, 0.0  ;;  %v744_v53 = vpop.f32.mrb[39].mxu1 }
 0x1e4   :  { %v870_v55 = vmax.f32 %v744_v53, 0.0 }
 0x1e5   :  { %v921_v57 = vpack.c.bf16 %v869_v52, %v867_v51 }
 0x1e6   :  { %v922_v58 = vpack.c.bf16 %v870_v55, %v868_v54 }
 0x1e8   :  { %v748_v19 = vpop.f32.mrb[40].mxu1  ;;  %1150 = vmatprep.mubr.bf16.mxu0 %v922_v58 }
 0x1e9   :  { %v750_v25 = vpop.f32.mrb[41].mxu1  ;;  %1151 = vmatmul.mubr.bf16.gmra.mrb[36].mxu0 %v921_v57  ;;  %v871_v34 = vmax.f32 %v748_v19, 0.0 }
 0x1ea   :  { %v752_v31 = vpop.f32.mrb[42].mxu1  ;;  %v872_v47 = vmax.f32 %v750_v25, 0.0 }
 0x1eb   :  { %v873_v38 = vmax.f32 %v752_v31, 0.0  ;;  %v754_v43 = vpop.f32.mrb[43].mxu1 }
 0x1ec   :  { %v874_v49 = vmax.f32 %v754_v43, 0.0 }
 0x1ed   :  { %v923_v56 = vpack.c.bf16 %v873_v38, %v871_v34 }
 0x1ee   :  { %v924_v59 = vpack.c.bf16 %v874_v49, %v872_v47 }
 0x1f0   :  { %v758_v60 = vpop.f32.mrb[44].mxu1  ;;  %1158 = vmatprep.mubr.bf16.mxu0 %v924_v59 }
 0x1f1   :  { %v760_v61 = vpop.f32.mrb[45].mxu1  ;;  %1159 = vmatmul.mubr.bf16.gmra.mrb[40].mxu0 %v923_v56  ;;  %v875_v63 = vmax.f32 %v758_v60, 0.0 }
 0x1f2   :  { %v762_v62 = vpop.f32.mrb[46].mxu1  ;;  %v876_v2 = vmax.f32 %v760_v61, 0.0 }
 0x1f3   :  { %v877_v0 = vmax.f32 %v762_v62, 0.0  ;;  %v764_v1 = vpop.f32.mrb[47].mxu1 }
 0x1f4   :  { %v878_v3 = vmax.f32 %v764_v1, 0.0 }
 0x1f5   :  { %v925_v4 = vpack.c.bf16 %v877_v0, %v875_v63 }
 0x1f6   :  { %v926_v18 = vpack.c.bf16 %v878_v3, %v876_v2 }
 0x1f8   :  { %v768_v5 = vpop.f32.mrb[48].mxu1  ;;  %1166 = vmatprep.mubr.bf16.mxu0 %v926_v18 }
 0x1f9   :  { %v770_v6 = vpop.f32.mrb[49].mxu1  ;;  %1167 = vmatmul.mubr.bf16.gmra.mrb[44].mxu0 %v925_v4  ;;  %v879_v8 = vmax.f32 %v768_v5, 0.0 }
 0x1fa   :  { %v772_v7 = vpop.f32.mrb[50].mxu1  ;;  %v880_v11 = vmax.f32 %v770_v6, 0.0 }
 0x1fb   :  { %v881_v9 = vmax.f32 %v772_v7, 0.0  ;;  %v774_v10 = vpop.f32.mrb[51].mxu1 }
 0x1fc   :  { %v882_v12 = vmax.f32 %v774_v10, 0.0 }
 0x1fd   :  { %v927_v13 = vpack.c.bf16 %v881_v9, %v879_v8 }
 0x1fe   :  { %v928_v14 = vpack.c.bf16 %v882_v12, %v880_v11 }
 0x200   :  { %v778_v15 = vpop.f32.mrb[52].mxu1  ;;  %1174 = vmatprep.mubr.bf16.mxu0 %v928_v14 }
 0x201   :  { %v780_v16 = vpop.f32.mrb[53].mxu1  ;;  %1175 = vmatmul.mubr.bf16.gmra.mrb[48].mxu0 %v927_v13  ;;  %v883_v20 = vmax.f32 %v778_v15, 0.0 }
 0x202   :  { %v782_v17 = vpop.f32.mrb[54].mxu1  ;;  %v884_v23 = vmax.f32 %v780_v16, 0.0 }
 0x203   :  { %v885_v21 = vmax.f32 %v782_v17, 0.0  ;;  %v784_v22 = vpop.f32.mrb[55].mxu1 }
 0x204   :  { %v886_v24 = vmax.f32 %v784_v22, 0.0 }
 0x205   :  { %v929_v26 = vpack.c.bf16 %v885_v21, %v883_v20 }
 0x206   :  { %v930_v27 = vpack.c.bf16 %v886_v24, %v884_v23  ;;  %v2082_v24 = vld [vmem:[%s2217_s5] ss:$0 sm:$0xff] }
 0x208   :  { %v788_v28 = vpop.f32.mrb[56].mxu1  ;;  %1182 = vmatprep.mubr.bf16.mxu0 %v930_v27 }
 0x209   :  { %v790_v29 = vpop.f32.mrb[57].mxu1  ;;  %1183 = vmatmul.mubr.bf16.gmra.mrb[52].mxu0 %v929_v26  ;;  %v887_v32 = vmax.f32 %v788_v28, 0.0 }
 0x20a   :  { %v792_v30 = vpop.f32.mrb[58].mxu1  ;;  %v888_v36 = vmax.f32 %v790_v29, 0.0 }
 0x20b   :  { %v889_v33 = vmax.f32 %v792_v30, 0.0  ;;  %v794_v35 = vpop.f32.mrb[59].mxu1 }
 0x20c   :  { %v890_v37 = vmax.f32 %v794_v35, 0.0 }
 0x20d   :  { %v931_v39 = vpack.c.bf16 %v889_v33, %v887_v32 }
 0x20e   :  { %v932_v40 = vpack.c.bf16 %v890_v37, %v888_v36 }
 0x210   :  { %v798_v41 = vpop.f32.mrb[60].mxu1  ;;  %1190 = vmatprep.mubr.bf16.mxu0 %v932_v40 }
 0x211   :  { %v800_v42 = vpop.f32.mrb[61].mxu1  ;;  %1191 = vmatmul.mubr.bf16.gmra.mrb[56].mxu0 %v931_v39  ;;  %v891_v45 = vmax.f32 %v798_v41, 0.0 }
 0x212   :  { %v802_v44 = vpop.f32.mrb[62].mxu1  ;;  %v892_v50 = vmax.f32 %v800_v42, 0.0 }
 0x213   :  { %v893_v46 = vmax.f32 %v802_v44, 0.0  ;;  %v804_v48 = vpop.f32.mrb[63].mxu1 }
 0x214   :  { %v894_v51 = vmax.f32 %v804_v48, 0.0 }
 0x215   :  { %v933_v52 = vpack.c.bf16 %v893_v46, %v891_v45 }
 0x216   :  { %v934_v53 = vpack.c.bf16 %v894_v51, %v892_v50 }
 0x218   :  { %v808_v54 = vpop.f32.mrb[64].mxu1  ;;  %1198 = vmatprep.mubr.bf16.mxu0 %v934_v53 }
 0x219   :  { %v810_v55 = vpop.f32.mrb[65].mxu1  ;;  %1199 = vmatmul.mubr.bf16.gmra.mrb[60].mxu0 %v933_v52  ;;  %v895_v58 = vmax.f32 %v808_v54, 0.0 }
 0x21a   :  { %v812_v57 = vpop.f32.mrb[66].mxu1  ;;  %v896_v31 = vmax.f32 %v810_v55, 0.0 }
 0x21b   :  { %v897_v19 = vmax.f32 %v812_v57, 0.0  ;;  %v814_v25 = vpop.f32.mrb[67].mxu1 }
 0x21c   :  { %v898_v34 = vmax.f32 %v814_v25, 0.0 }
 0x21d   :  { %v935_v38 = vpack.c.bf16 %v897_v19, %v895_v58 }
 0x21e   :  { %v936_v43 = vpack.c.bf16 %v898_v34, %v896_v31 }
 0x220   :  { %v818_v47 = vpop.f32.mrb[68].mxu1  ;;  %1206 = vmatprep.mubr.bf16.mxu0 %v936_v43 }
 0x221   :  { %v820_v49 = vpop.f32.mrb[69].mxu1  ;;  %1207 = vmatmul.mubr.bf16.gmra.mrb[64].mxu0 %v935_v38  ;;  %v899_v59 = vmax.f32 %v818_v47, 0.0 }
 0x222   :  { %v822_v56 = vpop.f32.mrb[70].mxu1  ;;  %v900_v62 = vmax.f32 %v820_v49, 0.0 }
 0x223   :  { %v901_v60 = vmax.f32 %v822_v56, 0.0  ;;  %v824_v61 = vpop.f32.mrb[71].mxu1 }
 0x224   :  { %v902_v63 = vmax.f32 %v824_v61, 0.0 }
 0x225   :  { %v937_v0 = vpack.c.bf16 %v901_v60, %v899_v59 }
 0x226   :  { %v938_v1 = vpack.c.bf16 %v902_v63, %v900_v62 }
 0x228   :  { %v828_v2 = vpop.f32.mrb[72].mxu1  ;;  %1214 = vmatprep.mubr.bf16.mxu0 %v938_v1 }
 0x229   :  { %v830_v3 = vpop.f32.mrb[73].mxu1  ;;  %1215 = vmatmul.mubr.bf16.gmra.mrb[68].mxu0 %v937_v0  ;;  %v903_v18 = vmax.f32 %v828_v2, 0.0 }
 0x22a   :  { %v832_v4 = vpop.f32.mrb[74].mxu1  ;;  %v904_v7 = vmax.f32 %v830_v3, 0.0 }
 0x22b   :  { %v905_v5 = vmax.f32 %v832_v4, 0.0  ;;  %v834_v6 = vpop.f32.mrb[75].mxu1 }
 0x22c   :  { %v906_v8 = vmax.f32 %v834_v6, 0.0 }
 0x22d   :  { %v939_v9 = vpack.c.bf16 %v905_v5, %v903_v18 }
 0x22e   :  { %v940_v10 = vpack.c.bf16 %v906_v8, %v904_v7 }
 0x230   :  { %v838_v11 = vpop.f32.mrb[76].mxu1  ;;  %1222 = vmatprep.mubr.bf16.mxu0 %v940_v10 }
 0x231   :  { %v840_v12 = vpop.f32.mrb[77].mxu1  ;;  %1223 = vmatmul.mubr.bf16.gmra.mrb[72].mxu0 %v939_v9  ;;  %v907_v14 = vmax.f32 %v838_v11, 0.0 }
 0x232   :  { %v842_v13 = vpop.f32.mrb[78].mxu1  ;;  %v908_v17 = vmax.f32 %v840_v12, 0.0 }
 0x233   :  { %v909_v15 = vmax.f32 %v842_v13, 0.0  ;;  %v844_v16 = vpop.f32.mrb[79].mxu1 }
 0x234   :  { %v910_v20 = vmax.f32 %v844_v16, 0.0 }
 0x235   :  { %v941_v21 = vpack.c.bf16 %v909_v15, %v907_v14 }
 0x236   :  { %v942_v22 = vpack.c.bf16 %v910_v20, %v908_v17 }
 0x238   :  { %1230 = vmatprep.mubr.bf16.mxu0 %v942_v22 }
 0x239   :  { %1231 = vmatmul.mubr.bf16.gmra.mrb[76].mxu0 %v941_v21 }
 0x294   :  { %v1469_v23 = vpop.f32.mrb[16].mxu0 }
 0x295   :  { %v1470_v26 = vpop.f32.mrb[17].mxu0 }
 0x296   :  { %v1471_v27 = vadd.f32 %v1470_v26, %v1469_v23  ;;  %v1472_v28 = vpop.f32.mrb[18].mxu0 }
 0x297   :  { %v1473_v29 = vpop.f32.mrb[19].mxu0 }
 0x298   :  { %v1113_v30 = vadd.f32 %v1471_v27, %v2082_v24  ;;  %v1474_v32 = vadd.f32 %v1473_v29, %v1472_v28 }
 0x29a   :  { %v1239_v33 = vmax.f32 %v1113_v30, 0.0  ;;  %v1116_v35 = vadd.f32 %v1474_v32, %v2082_v24 }
 0x29c   :  { %1271 = vst [vmem:[%s2218_s6] sm:$0xff] %v1239_v33  ;;  %v1240_v36 = vmax.f32 %v1116_v35, 0.0  ;;  %v1475_v37 = vpop.f32.mrb[20].mxu0 }
 0x29d   :  { %v1476_v39 = vpop.f32.mrb[21].mxu0 }
 0x29e   :  { %1272 = vst [vmem:[%s2218_s6 + $0x8] sm:$0xff] %v1240_v36  ;;  %v1477_v40 = vadd.f32 %v1476_v39, %v1475_v37  ;;  %v1478_v41 = vpop.f32.mrb[22].mxu0 }
 0x29f   :  { %v1479_v42 = vpop.f32.mrb[23].mxu0 }
 0x2a0   :  { %v1121_v44 = vadd.f32 %v1477_v40, %v2082_v24  ;;  %v1480_v45 = vadd.f32 %v1479_v42, %v1478_v41 }
 0x2a2   :  { %v1241_v46 = vmax.f32 %v1121_v44, 0.0  ;;  %v1124_v48 = vadd.f32 %v1480_v45, %v2082_v24 }
 0x2a4   :  { %1273 = vst [vmem:[%s2218_s6 + $0x10] sm:$0xff] %v1241_v46  ;;  %v1242_v50 = vmax.f32 %v1124_v48, 0.0  ;;  %v1481_v51 = vpop.f32.mrb[24].mxu0 }
 0x2a5   :  { %v1482_v52 = vpop.f32.mrb[25].mxu0 }
 0x2a6   :  { %1274 = vst [vmem:[%s2218_s6 + $0x18] sm:$0xff] %v1242_v50  ;;  %v1483_v53 = vadd.f32 %v1482_v52, %v1481_v51  ;;  %v1484_v54 = vpop.f32.mrb[26].mxu0 }
 0x2a7   :  { %v1485_v55 = vpop.f32.mrb[27].mxu0 }
 0x2a8   :  { %v1129_v57 = vadd.f32 %v1483_v53, %v2082_v24  ;;  %v1486_v58 = vadd.f32 %v1485_v55, %v1484_v54 }
 0x2aa   :  { %v1243_v19 = vmax.f32 %v1129_v57, 0.0  ;;  %v1132_v25 = vadd.f32 %v1486_v58, %v2082_v24 }
 0x2ac   :  { %1275 = vst [vmem:[%s2218_s6 + $0x20] sm:$0xff] %v1243_v19  ;;  %v1244_v31 = vmax.f32 %v1132_v25, 0.0  ;;  %v1487_v34 = vpop.f32.mrb[28].mxu0 }
 0x2ad   :  { %v1488_v38 = vpop.f32.mrb[29].mxu0 }
 0x2ae   :  { %1276 = vst [vmem:[%s2218_s6 + $0x28] sm:$0xff] %v1244_v31  ;;  %v1489_v43 = vadd.f32 %v1488_v38, %v1487_v34  ;;  %v1490_v47 = vpop.f32.mrb[30].mxu0 }
 0x2af   :  { %v1491_v49 = vpop.f32.mrb[31].mxu0 }
 0x2b0   :  { %v1137_v56 = vadd.f32 %v1489_v43, %v2082_v24  ;;  %v1492_v59 = vadd.f32 %v1491_v49, %v1490_v47 }
 0x2b2   :  { %v1245_v60 = vmax.f32 %v1137_v56, 0.0  ;;  %v1140_v61 = vadd.f32 %v1492_v59, %v2082_v24 }
 0x2b4   :  { %1277 = vst [vmem:[%s2218_s6 + $0x30] sm:$0xff] %v1245_v60  ;;  %v1246_v62 = vmax.f32 %v1140_v61, 0.0  ;;  %v1493_v63 = vpop.f32.mrb[32].mxu0 }
 0x2b5   :  { %v1494_v0 = vpop.f32.mrb[33].mxu0 }
 0x2b6   :  { %1278 = vst [vmem:[%s2218_s6 + $0x38] sm:$0xff] %v1246_v62  ;;  %v1495_v1 = vadd.f32 %v1494_v0, %v1493_v63  ;;  %v1496_v2 = vpop.f32.mrb[34].mxu0 }
 0x2b7   :  { %v1497_v3 = vpop.f32.mrb[35].mxu0 }
 0x2b8   :  { %v1145_v4 = vadd.f32 %v1495_v1, %v2082_v24  ;;  %v1498_v18 = vadd.f32 %v1497_v3, %v1496_v2 }
 0x2ba   :  { %v1247_v5 = vmax.f32 %v1145_v4, 0.0  ;;  %v1148_v6 = vadd.f32 %v1498_v18, %v2082_v24 }
 0x2bc   :  { %1279 = vst [vmem:[%s2218_s6 + $0x40] sm:$0xff] %v1247_v5  ;;  %v1248_v7 = vmax.f32 %v1148_v6, 0.0  ;;  %v1499_v8 = vpop.f32.mrb[36].mxu0 }
 0x2bd   :  { %v1500_v9 = vpop.f32.mrb[37].mxu0 }
 0x2be   :  { %1280 = vst [vmem:[%s2218_s6 + $0x48] sm:$0xff] %v1248_v7  ;;  %v1501_v10 = vadd.f32 %v1500_v9, %v1499_v8  ;;  %v1502_v11 = vpop.f32.mrb[38].mxu0 }
 0x2bf   :  { %v1503_v12 = vpop.f32.mrb[39].mxu0 }
 0x2c0   :  { %v1153_v13 = vadd.f32 %v1501_v10, %v2082_v24  ;;  %v1504_v14 = vadd.f32 %v1503_v12, %v1502_v11 }
 0x2c2   :  { %v1249_v15 = vmax.f32 %v1153_v13, 0.0  ;;  %v1156_v16 = vadd.f32 %v1504_v14, %v2082_v24 }
 0x2c4   :  { %1281 = vst [vmem:[%s2218_s6 + $0x50] sm:$0xff] %v1249_v15  ;;  %v1250_v17 = vmax.f32 %v1156_v16, 0.0  ;;  %v1505_v20 = vpop.f32.mrb[40].mxu0 }
 0x2c5   :  { %v1506_v21 = vpop.f32.mrb[41].mxu0 }
 0x2c6   :  { %1282 = vst [vmem:[%s2218_s6 + $0x58] sm:$0xff] %v1250_v17  ;;  %v1507_v22 = vadd.f32 %v1506_v21, %v1505_v20  ;;  %v1508_v23 = vpop.f32.mrb[42].mxu0 }
 0x2c7   :  { %v1509_v26 = vpop.f32.mrb[43].mxu0 }
 0x2c8   :  { %v1161_v27 = vadd.f32 %v1507_v22, %v2082_v24  ;;  %v1510_v28 = vadd.f32 %v1509_v26, %v1508_v23 }
 0x2ca   :  { %v1251_v29 = vmax.f32 %v1161_v27, 0.0  ;;  %v1164_v30 = vadd.f32 %v1510_v28, %v2082_v24 }
 0x2cc   :  { %1283 = vst [vmem:[%s2218_s6 + $0x60] sm:$0xff] %v1251_v29  ;;  %v1252_v32 = vmax.f32 %v1164_v30, 0.0  ;;  %v1511_v33 = vpop.f32.mrb[44].mxu0 }
 0x2cd   :  { %v1512_v35 = vpop.f32.mrb[45].mxu0 }
 0x2ce   :  { %1284 = vst [vmem:[%s2218_s6 + $0x68] sm:$0xff] %v1252_v32  ;;  %v1513_v36 = vadd.f32 %v1512_v35, %v1511_v33  ;;  %v1514_v37 = vpop.f32.mrb[46].mxu0 }
 0x2cf   :  { %v1515_v39 = vpop.f32.mrb[47].mxu0 }
 0x2d0   :  { %v1169_v40 = vadd.f32 %v1513_v36, %v2082_v24  ;;  %v1516_v41 = vadd.f32 %v1515_v39, %v1514_v37 }
 0x2d2   :  { %v1253_v42 = vmax.f32 %v1169_v40, 0.0  ;;  %v1172_v44 = vadd.f32 %v1516_v41, %v2082_v24 }
 0x2d4   :  { %1285 = vst [vmem:[%s2218_s6 + $0x70] sm:$0xff] %v1253_v42  ;;  %v1254_v45 = vmax.f32 %v1172_v44, 0.0  ;;  %v1517_v46 = vpop.f32.mrb[48].mxu0 }
 0x2d5   :  { %v1518_v48 = vpop.f32.mrb[49].mxu0 }
 0x2d6   :  { %1286 = vst [vmem:[%s2218_s6 + $0x78] sm:$0xff] %v1254_v45  ;;  %v1519_v50 = vadd.f32 %v1518_v48, %v1517_v46  ;;  %v1520_v51 = vpop.f32.mrb[50].mxu0 }
 0x2d7   :  { %v1521_v52 = vpop.f32.mrb[51].mxu0 }
 0x2d8   :  { %v1177_v53 = vadd.f32 %v1519_v50, %v2082_v24  ;;  %v1522_v54 = vadd.f32 %v1521_v52, %v1520_v51 }
 0x2da   :  { %v1255_v55 = vmax.f32 %v1177_v53, 0.0  ;;  %v1180_v57 = vadd.f32 %v1522_v54, %v2082_v24 }
 0x2dc   :  { %1287 = vst [vmem:[%s2218_s6 + $0x80] sm:$0xff] %v1255_v55  ;;  %v1256_v58 = vmax.f32 %v1180_v57, 0.0  ;;  %v1523_v19 = vpop.f32.mrb[52].mxu0 }
 0x2dd   :  { %v1524_v25 = vpop.f32.mrb[53].mxu0 }
 0x2de   :  { %1288 = vst [vmem:[%s2218_s6 + $0x88] sm:$0xff] %v1256_v58  ;;  %v1525_v31 = vadd.f32 %v1524_v25, %v1523_v19  ;;  %v1526_v34 = vpop.f32.mrb[54].mxu0 }
 0x2df   :  { %v1527_v38 = vpop.f32.mrb[55].mxu0 }
 0x2e0   :  { %v1185_v43 = vadd.f32 %v1525_v31, %v2082_v24  ;;  %v1528_v47 = vadd.f32 %v1527_v38, %v1526_v34 }
 0x2e2   :  { %v1257_v49 = vmax.f32 %v1185_v43, 0.0  ;;  %v1188_v56 = vadd.f32 %v1528_v47, %v2082_v24 }
 0x2e4   :  { %1289 = vst [vmem:[%s2218_s6 + $0x90] sm:$0xff] %v1257_v49  ;;  %v1258_v59 = vmax.f32 %v1188_v56, 0.0  ;;  %v1529_v60 = vpop.f32.mrb[56].mxu0 }
 0x2e5   :  { %v1530_v61 = vpop.f32.mrb[57].mxu0 }
 0x2e6   :  { %1290 = vst [vmem:[%s2218_s6 + $0x98] sm:$0xff] %v1258_v59  ;;  %v1531_v62 = vadd.f32 %v1530_v61, %v1529_v60  ;;  %v1532_v63 = vpop.f32.mrb[58].mxu0 }
 0x2e7   :  { %v1533_v0 = vpop.f32.mrb[59].mxu0 }
 0x2e8   :  { %v1193_v1 = vadd.f32 %v1531_v62, %v2082_v24  ;;  %v1534_v2 = vadd.f32 %v1533_v0, %v1532_v63 }
 0x2ea   :  { %v1259_v3 = vmax.f32 %v1193_v1, 0.0  ;;  %v1196_v4 = vadd.f32 %v1534_v2, %v2082_v24 }
 0x2ec   :  { %1291 = vst [vmem:[%s2218_s6 + $0xa0] sm:$0xff] %v1259_v3  ;;  %v1260_v18 = vmax.f32 %v1196_v4, 0.0  ;;  %v1535_v5 = vpop.f32.mrb[60].mxu0 }
 0x2ed   :  { %v1536_v6 = vpop.f32.mrb[61].mxu0 }
 0x2ee   :  { %1292 = vst [vmem:[%s2218_s6 + $0xa8] sm:$0xff] %v1260_v18  ;;  %v1537_v7 = vadd.f32 %v1536_v6, %v1535_v5  ;;  %v1538_v8 = vpop.f32.mrb[62].mxu0 }
 0x2ef   :  { %v1539_v9 = vpop.f32.mrb[63].mxu0 }
 0x2f0   :  { %v1201_v10 = vadd.f32 %v1537_v7, %v2082_v24  ;;  %v1540_v11 = vadd.f32 %v1539_v9, %v1538_v8 }
 0x2f2   :  { %v1261_v12 = vmax.f32 %v1201_v10, 0.0  ;;  %v1204_v13 = vadd.f32 %v1540_v11, %v2082_v24 }
 0x2f4   :  { %1293 = vst [vmem:[%s2218_s6 + $0xb0] sm:$0xff] %v1261_v12  ;;  %v1262_v14 = vmax.f32 %v1204_v13, 0.0  ;;  %v1541_v15 = vpop.f32.mrb[64].mxu0 }
 0x2f5   :  { %v1542_v16 = vpop.f32.mrb[65].mxu0 }
 0x2f6   :  { %1294 = vst [vmem:[%s2218_s6 + $0xb8] sm:$0xff] %v1262_v14  ;;  %v1543_v17 = vadd.f32 %v1542_v16, %v1541_v15  ;;  %v1544_v20 = vpop.f32.mrb[66].mxu0 }
 0x2f7   :  { %v1545_v21 = vpop.f32.mrb[67].mxu0 }
 0x2f8   :  { %v1209_v22 = vadd.f32 %v1543_v17, %v2082_v24  ;;  %v1546_v23 = vadd.f32 %v1545_v21, %v1544_v20 }
 0x2fa   :  { %v1263_v26 = vmax.f32 %v1209_v22, 0.0  ;;  %v1212_v27 = vadd.f32 %v1546_v23, %v2082_v24 }
 0x2fc   :  { %1295 = vst [vmem:[%s2218_s6 + $0xc0] sm:$0xff] %v1263_v26  ;;  %v1264_v28 = vmax.f32 %v1212_v27, 0.0  ;;  %v1547_v29 = vpop.f32.mrb[68].mxu0 }
 0x2fd   :  { %v1548_v30 = vpop.f32.mrb[69].mxu0 }
 0x2fe   :  { %1296 = vst [vmem:[%s2218_s6 + $0xc8] sm:$0xff] %v1264_v28  ;;  %v1549_v32 = vadd.f32 %v1548_v30, %v1547_v29  ;;  %v1550_v33 = vpop.f32.mrb[70].mxu0 }
 0x2ff   :  { %v1551_v35 = vpop.f32.mrb[71].mxu0 }
 0x300   :  { %v1217_v36 = vadd.f32 %v1549_v32, %v2082_v24  ;;  %v1552_v37 = vadd.f32 %v1551_v35, %v1550_v33 }
 0x302   :  { %v1265_v39 = vmax.f32 %v1217_v36, 0.0  ;;  %v1220_v40 = vadd.f32 %v1552_v37, %v2082_v24 }
 0x304   :  { %1297 = vst [vmem:[%s2218_s6 + $0xd0] sm:$0xff] %v1265_v39  ;;  %v1266_v41 = vmax.f32 %v1220_v40, 0.0  ;;  %v1553_v42 = vpop.f32.mrb[72].mxu0 }
 0x305   :  { %v1554_v44 = vpop.f32.mrb[73].mxu0 }
 0x306   :  { %1298 = vst [vmem:[%s2218_s6 + $0xd8] sm:$0xff] %v1266_v41  ;;  %v1555_v45 = vadd.f32 %v1554_v44, %v1553_v42  ;;  %v1556_v46 = vpop.f32.mrb[74].mxu0 }
 0x307   :  { %v1557_v48 = vpop.f32.mrb[75].mxu0 }
 0x308   :  { %v1225_v50 = vadd.f32 %v1555_v45, %v2082_v24  ;;  %v1558_v51 = vadd.f32 %v1557_v48, %v1556_v46 }
 0x30a   :  { %v1267_v52 = vmax.f32 %v1225_v50, 0.0  ;;  %v1228_v53 = vadd.f32 %v1558_v51, %v2082_v24 }
 0x30c   :  { %1299 = vst [vmem:[%s2218_s6 + $0xe0] sm:$0xff] %v1267_v52  ;;  %v1268_v54 = vmax.f32 %v1228_v53, 0.0  ;;  %v1559_v55 = vpop.f32.mrb[76].mxu0 }
 0x30d   :  { %v1560_v57 = vpop.f32.mrb[77].mxu0 }
 0x30e   :  { %1300 = vst [vmem:[%s2218_s6 + $0xe8] sm:$0xff] %v1268_v54  ;;  %v1561_v58 = vadd.f32 %v1560_v57, %v1559_v55  ;;  %v1562_v19 = vpop.f32.mrb[78].mxu0 }
 0x30f   :  { %v1563_v25 = vpop.f32.mrb[79].mxu0 }
 0x310   :  { %v1233_v31 = vadd.f32 %v1561_v58, %v2082_v24  ;;  %v1564_v34 = vadd.f32 %v1563_v25, %v1562_v19 }
 0x312   :  { %v1269_v38 = vmax.f32 %v1233_v31, 0.0  ;;  %v1236_v43 = vadd.f32 %v1564_v34, %v2082_v24 }
 0x314   :  { %1301 = vst [vmem:[%s2218_s6 + $0xf0] sm:$0xff] %v1269_v38  ;;  %v1270_v47 = vmax.f32 %v1236_v43, 0.0 }
 0x316   :  { %1302 = vst [vmem:[%s2218_s6 + $0xf8] sm:$0xff] %v1270_v47 }

</bundles_post_ra>
